<compile_context>
chip_gen: v5e
topology: v5e:2x2
jax: 0.10.0
libtpu: 0.0.40
codegen_flags: <defaults>
</compile_context>

<pallas_src>
import jax
import jax.numpy as jnp
from jax.experimental import pallas as pl
from jax.experimental.pallas import tpu as pltpu


def _round_up(x: int, m: int) -> int:
    return ((x + m - 1) // m) * m


def _cdiv(a: int, b: int) -> int:
    return (a + b - 1) // b


def _vmem_cap_bytes() -> int:
    """Generation-aware cap for vmem_limit_bytes (leaves headroom for internal scratch)."""
    cap = 64 << 20
    try:
        cap = int(getattr(pltpu.get_tpu_info(), "vmem_capacity_bytes", cap))
    except Exception:
        pass
    # v7x: 64 MiB physical -> ~48 MiB usable; v5e/v6e: 128 MiB -> cap at 100 MiB.
    return max(32 << 20, min(100 << 20, cap - (16 << 20)))


# ----------------------------------------------------------------------------
# Stage 1: one-shot weight blend  W = W0 + (W1 - W0) * t   (elementwise, tiled)
# ----------------------------------------------------------------------------
def _blend_kernel(t_ref, a_ref, b_ref, o_ref):
    t = t_ref[0, 0]  # f32 scalar in SMEM
    a = a_ref[...].astype(jnp.float32)
    b = b_ref[...].astype(jnp.float32)
    o_ref[...] = (a + (b - a) * t).astype(o_ref.dtype)


def _blend_weights(t_r, w0_p, w1_p, dtype, bk, bn, vmem_cap):
    Kp, Np = w0_p.shape
    grid = (Kp // bk, Np // bn)
    # 3 tensors double-buffered; f32 temporaries counted conservatively.
    vmem_need = 3 * 2 * bk * bn * max(4, dtype.itemsize)
    vmem_limit = int(min(max(vmem_need * 2 + (1 << 20), 8 << 20), vmem_cap))
    return pl.pallas_call(
        _blend_kernel,
        out_shape=jax.ShapeDtypeStruct((Kp, Np), dtype),
        grid_spec=pltpu.PrefetchScalarGridSpec(
            num_scalar_prefetch=0,
            grid=grid,
            in_specs=[
                pl.BlockSpec(memory_space=pltpu.MemorySpace.SMEM),  # t
                pl.BlockSpec((bk, bn), lambda i, j: (i, j)),        # w0
                pl.BlockSpec((bk, bn), lambda i, j: (i, j)),        # w1
            ],
            out_specs=pl.BlockSpec((bk, bn), lambda i, j: (i, j)),
        ),
        compiler_params=pltpu.CompilerParams(
            dimension_semantics=("parallel", "parallel"),
            vmem_limit_bytes=vmem_limit,
        ),
    )(t_r, w0_p, w1_p)


# ----------------------------------------------------------------------------
# Stage 2: tiled  out = x @ W + b   (M, N, K grid; K innermost / "arbitrary")
# ----------------------------------------------------------------------------
def _linear_bias_kernel_acc(x_ref, w_ref, b_ref, o_ref, acc_ref):
    """bf16 output: f32 VMEM accumulator, cast once in finalize."""
    k = pl.program_id(2)

    @pl.when(k == 0)
    def _init():
        acc_ref[...] = jnp.zeros_like(acc_ref)

    acc_ref[...] += jnp.dot(x_ref[...], w_ref[...],
                            preferred_element_type=jnp.float32)

    @pl.when(k == pl.num_programs(2) - 1)
    def _finalize():
        o_ref[...] = (acc_ref[...] + b_ref[...]).astype(o_ref.dtype)


def _linear_bias_kernel_f32(x_ref, w_ref, b_ref, o_ref):
    """f32 output: accumulate directly into the output block (no scratch)."""
    k = pl.program_id(2)

    @pl.when(k == 0)
    def _init():
        o_ref[...] = jnp.broadcast_to(b_ref[...], o_ref.shape)

    o_ref[...] += jnp.dot(x_ref[...], w_ref[...],
                          preferred_element_type=jnp.float32)


def blend_linear(t, x, w0, b0, w1, b1, *, tm=512, tn=512, tk=512, dtype=None):
    """BlendLinear forward.

    t       : scalar blend factor.
    x       : [B, dim_in] activations.
    w0, w1  : [dim_in, dim_out] weights (nn.Linear.weight.T layout).
    b0, b1  : [dim_out] biases.
    tm/tn/tk: batch / out-feature / in-feature tile sizes (clamped to the
              padded problem).  Defaults fit VMEM on v5e/v6e/v7x.
    dtype   : compute dtype (f32 or bf16); accumulation is always f32.
    """
    B, dim_in = x.shape
    dim_out = w0.shape[1]
    dtype = jnp.dtype(dtype or x.dtype)
    if dtype not in (jnp.dtype(jnp.float32), jnp.dtype(jnp.bfloat16)):
        raise ValueError("blend_linear supports float32 / bfloat16 compute only "
                         f"(got {dtype}); int8/fp8 is not supported.")
    out_dtype = dtype
    itemsize = dtype.itemsize
    sub = 8 if itemsize == 4 else 16  # sublane alignment for the compute dtype

    # Effective tiles: (sub, 128)-aligned, never larger than the padded problem.
    tm_eff = min(tm, _round_up(B, sub))
    tn_eff = min(tn, _round_up(dim_out, 128))
    tk_eff = min(tk, _round_up(dim_in, 128))

    # If the whole batch fits in one M block, expose >= 2 parallel N blocks so
    # both v7x TensorCores get work (no-op on single-TC chips).
    if _round_up(B, tm_eff) == tm_eff:
        n_total = _round_up(dim_out, 128)
        if n_total >= 256:
            tn_eff = min(tn_eff, _round_up(_cdiv(n_total, 2), 128))

    Mp = _round_up(B, tm_eff)
    Np = _round_up(dim_out, tn_eff)
    Kp = _round_up(dim_in, tk_eff)
    grid_m, grid_n, grid_k = Mp // tm_eff, Np // tn_eff, Kp // tk_eff

    def _pad(a, shape):
        pads = [(0, s - d) for d, s in zip(a.shape, shape)]
        if any(p[1] for p in pads):
            a = jnp.pad(a, pads)  # zero padding (neutral for K / N)
        return a

    # In a real model, store weights pre-cast + pre-padded at init so these are
    # no-ops per call.
    w0_p = _pad(w0.astype(dtype), (Kp, Np))
    w1_p = _pad(w1.astype(dtype), (Kp, Np))
    x_p = _pad(x.astype(dtype), (Mp, Kp))
    t_f32 = jnp.asarray(t, jnp.float32)
    t_r = t_f32.reshape(1, 1)

    vmem_cap = _vmem_cap_bytes()

    # ---- Stage 1: blend parameters once.
    w_p = _blend_weights(t_r, w0_p, w1_p, dtype, tk_eff, tn_eff, vmem_cap)
    b_f32 = b0.astype(jnp.float32)
    b_f32 = b_f32 + (b1.astype(jnp.float32) - b_f32) * t_f32
    b_p = _pad(b_f32.reshape(1, dim_out), (1, Np))

    # ---- Stage 2: matmul + bias.
    use_scratch = out_dtype != jnp.float32
    # Deeper weight pipelining when weight-DMA-bound (single M block).
    wbuf = 3 if (grid_m == 1 and grid_n * grid_k >= 3) else 2
    if wbuf == 3:
        w_spec = pl.BlockSpec((tk_eff, tn_eff), lambda i, j, k: (k, j),
                              pipeline_mode=pl.Buffered(3))
    else:
        w_spec = pl.BlockSpec((tk_eff, tn_eff), lambda i, j, k: (k, j))

    vmem_need = (
        2 * tm_eff * tk_eff * itemsize               # x tiles (double-buffered)
        + wbuf * tk_eff * tn_eff * itemsize          # blended W tiles
        + 2 * tn_eff * 4                             # bias tiles (f32)
        + 2 * tm_eff * tn_eff * out_dtype.itemsize   # output tiles
        + (tm_eff * tn_eff * 4 if use_scratch else 0)  # f32 accumulator
    )
    vmem_limit = int(min(max(int(vmem_need * 1.5) + (2 << 20), 8 << 20), vmem_cap))

    kernel = _linear_bias_kernel_acc if use_scratch else _linear_bias_kernel_f32
    scratch = [pltpu.VMEM((tm_eff, tn_eff), jnp.float32)] if use_scratch else []

    out_p = pl.pallas_call(
        kernel,
        out_shape=jax.ShapeDtypeStruct((Mp, Np), out_dtype),
        grid_spec=pltpu.PrefetchScalarGridSpec(
            num_scalar_prefetch=0,
            grid=(grid_m, grid_n, grid_k),
            in_specs=[
                pl.BlockSpec((tm_eff, tk_eff), lambda i, j, k: (i, k)),  # x
                w_spec,                                                  # W
                pl.BlockSpec((1, tn_eff), lambda i, j, k: (0, j)),       # b
            ],
            out_specs=pl.BlockSpec((tm_eff, tn_eff), lambda i, j, k: (i, j)),
            scratch_shapes=scratch,
        ),
        compiler_params=pltpu.CompilerParams(
            dimension_semantics=("parallel", "parallel", "arbitrary"),
            vmem_limit_bytes=vmem_limit,
        ),
    )(x_p, w_p, b_p)

    return out_p[:B, :dim_out]


if __name__ == "__main__":
    key = jax.random.PRNGKey(0)
    k_x, k_t, k_w0, k_b0, k_w1, k_b1, k_rag = jax.random.split(key, 7)

    # ---------------- small case (dim_in=32, dim_out=64, batch=16) ------------
    B, dim_in, dim_out = 16, 32, 64
    bound = 1.0 / (dim_in ** 0.5)
    # Parameters stored in [dim_in, dim_out] (pre-transposed) layout.
    w0 = jax.random.uniform(k_w0, (dim_in, dim_out), jnp.float32, -bound, bound)
    b0 = jax.random.uniform(k_b0, (dim_out,), jnp.float32, -bound, bound)
    w1 = jax.random.uniform(k_w1, (dim_in, dim_out), jnp.float32, -bound, bound)
    b1 = jax.random.uniform(k_b1, (dim_out,), jnp.float32, -bound, bound)
    x = jax.random.normal(k_x, (B, dim_in), jnp.float32)
    t = jax.random.uniform(k_t, (), jnp.float32)  # scalar blend factor in [0, 1)

    # Reference: same math as the PyTorch module (blend of outputs).
    y0 = x @ w0 + b0
    y1 = x @ w1 + b1
    ref = y0 + (y1 - y0) * t

    out_f32 = jax.block_until_ready(
        blend_linear(t, x, w0, b0, w1, b1, dtype=jnp.float32))
    assert out_f32.shape == (B, dim_out)
    assert jnp.allclose(out_f32, ref, atol=1e-4, rtol=1e-4)

    out_bf16 = jax.block_until_ready(
        blend_linear(t, x, w0, b0, w1, b1, dtype=jnp.bfloat16))
    assert out_bf16.shape == (B, dim_out)
    assert jnp.allclose(out_bf16.astype(jnp.float32), ref, atol=5e-2, rtol=5e-2)

    # ------- ragged case with forced small tiles: exercises zero-padding, ------
    # ------- multi-step K accumulation, >=2 N blocks and Buffered(3) weights ---
    B2, di2, do2 = 20, 300, 200
    bound2 = 1.0 / (di2 ** 0.5)
    kk = jax.random.split(k_rag, 5)
    w0b = jax.random.uniform(kk[0], (di2, do2), jnp.float32, -bound2, bound2)
    b0b = jax.random.uniform(kk[1], (do2,), jnp.float32, -bound2, bound2)
    w1b = jax.random.uniform(kk[2], (di2, do2), jnp.float32, -bound2, bound2)
    b1b = jax.random.uniform(kk[3], (do2,), jnp.float32, -bound2, bound2)
    xb = jax.random.normal(kk[4], (B2, di2), jnp.float32)

    refb = (xb @ w0b + b0b) + ((xb @ w1b + b1b) - (xb @ w0b + b0b)) * t
    outb = jax.block_until_ready(
        blend_linear(t, xb, w0b, b0b, w1b, b1b,
                     tm=64, tn=128, tk=128, dtype=jnp.float32))
    assert outb.shape == (B2, do2)
    assert jnp.allclose(outb, refb, atol=1e-4, rtol=1e-4)

    print("KERNEL_OK")
</pallas_src>

<mosaic_0001>
module attributes {stable_mosaic.version = 11 : i64} {
  func.func @_blend_kernel(%arg0: i32, %arg1: i32, %arg2: memref<1x1xf32, #tpu.memory_space<smem>>, %arg3: memref<128x128xf32, #tpu.memory_space<vmem>>, %arg4: memref<128x128xf32, #tpu.memory_space<vmem>>, %arg5: memref<128x128xf32, #tpu.memory_space<vmem>>) attributes {dimension_semantics = [#tpu.dimension_semantics<parallel>, #tpu.dimension_semantics<parallel>], iteration_bounds = array<i64: 1, 1>, scalar_prefetch = 0 : i64, scratch_operands = 0 : i64, tpu.core_type = #tpu.core_type<tc>, window_params = [{transform_indices = @transform_0, window_bounds = array<i64: 1, 1>}, {transform_indices = @transform_1, window_bounds = array<i64: 128, 128>}, {transform_indices = @transform_2, window_bounds = array<i64: 128, 128>}, {transform_indices = @transform_3, window_bounds = array<i64: 128, 128>}]} {
    %c0 = arith.constant 0 : index
    %c0_0 = arith.constant 0 : index
    %0 = memref.load %arg2[%c0, %c0_0] : memref<1x1xf32, #tpu.memory_space<smem>>
    %c0_1 = arith.constant 0 : index
    %c0_2 = arith.constant 0 : index
    %1 = vector.load %arg3[%c0_1, %c0_2] : memref<128x128xf32, #tpu.memory_space<vmem>>, vector<128x128xf32>
    %c0_3 = arith.constant 0 : index
    %c0_4 = arith.constant 0 : index
    %2 = vector.load %arg4[%c0_3, %c0_4] : memref<128x128xf32, #tpu.memory_space<vmem>>, vector<128x128xf32>
    %3 = arith.subf %2, %1 : vector<128x128xf32>
    %4 = vector.broadcast %0 : f32 to vector<128x128xf32>
    %5 = arith.mulf %3, %4 : vector<128x128xf32>
    %6 = arith.addf %1, %5 : vector<128x128xf32>
    %c0_5 = arith.constant 0 : index
    %c0_6 = arith.constant 0 : index
    %7 = vector.load %arg5[%c0_5, %c0_6] : memref<128x128xf32, #tpu.memory_space<vmem>>, vector<128x128xf32>
    tpu.vector_store %arg5[%c0_5, %c0_6], %6 {strides = array<i32>} : memref<128x128xf32, #tpu.memory_space<vmem>>, vector<128x128xf32>,
    return
  }
  func.func @transform_0(%arg0: i32, %arg1: i32) -> (i32, i32) {
    %c0_i32 = arith.constant 0 : i32
    %c0_i32_0 = arith.constant 0 : i32
    %c0_i32_1 = arith.constant 0 : i32
    return %c0_i32, %c0_i32_0 : i32, i32
  }
  func.func @transform_1(%arg0: i32, %arg1: i32) -> (i32, i32) {
    %c0_i32 = arith.constant 0 : i32
    return %arg0, %arg1 : i32, i32
  }
  func.func @transform_2(%arg0: i32, %arg1: i32) -> (i32, i32) {
    %c0_i32 = arith.constant 0 : i32
    return %arg0, %arg1 : i32, i32
  }
  func.func @transform_3(%arg0: i32, %arg1: i32) -> (i32, i32) {
    %c0_i32 = arith.constant 0 : i32
    return %arg0, %arg1 : i32, i32
  }
}

</mosaic_0001>

<bundles_post_ra>
// kernel: tpu_custom_call.1
= control target key start
LH: loop header
LB: loop body
LE: loop exit
PB: predicated region body
PF: predicated region fallthrough
CT: control target
= control target key end

     0   :  { %9 = vsyncpa [#allocation4], 0  ;;  %s313_s0 = inlined_call_operand.<no memory space> [shape: f32[1,1], index: 0, kind: input, shape index: {}]   ;;  %s314_s1 = inlined_call_operand.hbm [shape: f32[128,128], index: 1, kind: input, shape index: {}]   ;;  %s315_s2 = inlined_call_operand.hbm [shape: f32[128,128], index: 2, kind: input, shape index: {}]   ;;  %s316_s3 = inlined_call_operand.hbm [shape: f32[128,128], index: 3, kind: output, shape index: {}]  }
   0x1   :  { %10 = vsyncpa [#allocation7], 0 }
   0x2   :  { %11 = vsyncpa [#allocation5], 0  ;;  %s18_s14 = sshll.u32 %s314_s1, 4  ;;  %s249_s15 = smov [#allocation3]   ;;  %s19_s14 = int_to_ptr.hbm [resolvable:$true] %s18_s14 }
   0x3   :  { %s20_s16 = sshll.u32 %s249_s15, 4  ;;  %s31_s19 = sshll.u32 %s315_s2, 4  ;;  %s21_s16 = int_to_ptr.vmem [resolvable:$true] %s20_s16  ;;  %s32_s19 = int_to_ptr.hbm [resolvable:$true] %s31_s19 }
   0x4   :  { %s250_s20 = smov 128   ;;  %s251_s21 = smov 8  }
   0x5   :  { %26 = dma.hbm_to_vmem [thread:$0]  %s19_s14, 2048, %s21_s16, [#allocation4], %s250_s20, %s250_s20, %s251_s21  }
   0x6   :  { %s252_s22 = smov [#allocation6]  }
   0x7   :  { %s33_s23 = sshll.u32 %s252_s22, 4  ;;  %s34_s23 = int_to_ptr.vmem [resolvable:$true] %s33_s23 }
   0x8   :  { %39 = dma.hbm_to_vmem [thread:$0]  %s32_s19, 2048, %s34_s23, [#allocation7], %s250_s20, %s250_s20, %s251_s21  }
   0x9   :  { %243 = dma.done.wait [#allocation4], 2048  }
   0xa   :  { %244 = vsyncadd [#allocation4], 4294965248 }
   0xb   :  { %245 = dma.done.wait [#allocation7], 2048  }
   0xc   :  { %246 = vsyncadd [#allocation7], 4294965248  ;;  %v49_v0 = vld [vmem:[#allocation3] sm:$0xff]  ;;  %v289_v2 = vstv %s313_s0  ;;  %v50_v3 = vld [vmem:[#allocation3 + $0x8] sm:$0xff]  ;;  %s253_s0 = smov [#allocation8]   ;;  %s152_s27 = sshll.u32 %s316_s3, 4  ;;  %s153_s27 = int_to_ptr.hbm [resolvable:$true] %s152_s27 }
   0xd   :  { %v65_v1 = vld [vmem:[#allocation6] sm:$0xff]  ;;  %v66_v5 = vld [vmem:[#allocation6 + $0x8] sm:$0xff]  ;;  %v51_v6 = vld [vmem:[#allocation3 + $0x10] sm:$0xff]  ;;  %s150_s24 = sshll.u32 %s253_s0, 4  ;;  %s151_s24 = int_to_ptr.vmem [resolvable:$true] %s150_s24 }
   0xe   :  { %v81_v4 = vsub.f32 %v65_v1, %v49_v0  ;;  %v67_v7 = vld [vmem:[#allocation6 + $0x10] sm:$0xff]  ;;  %v82_v8 = vsub.f32 %v66_v5, %v50_v3  ;;  %v52_v10 = vld [vmem:[#allocation3 + $0x18] sm:$0xff]  ;;  %v53_v12 = vld [vmem:[#allocation3 + $0x20] sm:$0xff] }
   0xf   :  { %v83_v9 = vsub.f32 %v67_v7, %v51_v6  ;;  %v68_v11 = vld [vmem:[#allocation6 + $0x18] sm:$0xff]  ;;  %v69_v15 = vld [vmem:[#allocation6 + $0x20] sm:$0xff]  ;;  %v54_v16 = vld [vmem:[#allocation3 + $0x28] sm:$0xff] }
  0x10   :  { %v98_v13 = vmul.f32 %v289_v2, %v81_v4  ;;  %v84_v14 = vsub.f32 %v68_v11, %v52_v10  ;;  %v70_v17 = vld [vmem:[#allocation6 + $0x28] sm:$0xff]  ;;  %v99_v18 = vmul.f32 %v289_v2, %v82_v8  ;;  %v85_v20 = vsub.f32 %v69_v15, %v53_v12  ;;  %v55_v22 = vld [vmem:[#allocation3 + $0x30] sm:$0xff]  ;;  %v56_v24 = vld [vmem:[#allocation3 + $0x38] sm:$0xff] }
  0x11   :  { %v100_v19 = vmul.f32 %v289_v2, %v83_v9  ;;  %v86_v21 = vsub.f32 %v70_v17, %v54_v16  ;;  %v71_v23 = vld [vmem:[#allocation6 + $0x30] sm:$0xff]  ;;  %v72_v28 = vld [vmem:[#allocation6 + $0x38] sm:$0xff]  ;;  %v57_v29 = vld [vmem:[#allocation3 + $0x40] sm:$0xff] }
  0x12   :  { %v114_v25 = vadd.f32 %v98_v13, %v49_v0  ;;  %v101_v26 = vmul.f32 %v289_v2, %v84_v14  ;;  %v87_v27 = vsub.f32 %v71_v23, %v55_v22  ;;  %v73_v30 = vld [vmem:[#allocation6 + $0x40] sm:$0xff]  ;;  %v115_v31 = vadd.f32 %v99_v18, %v50_v3  ;;  %v58_v35 = vld [vmem:[#allocation3 + $0x48] sm:$0xff]  ;;  %v59_v37 = vld [vmem:[#allocation3 + $0x50] sm:$0xff] }
  0x13   :  { %v116_v32 = vadd.f32 %v100_v19, %v51_v6  ;;  %v102_v33 = vmul.f32 %v289_v2, %v85_v20  ;;  %v103_v34 = vmul.f32 %v289_v2, %v86_v21  ;;  %v74_v36 = vld [vmem:[#allocation6 + $0x48] sm:$0xff]  ;;  %v88_v40 = vsub.f32 %v72_v28, %v56_v24  ;;  %v75_v42 = vld [vmem:[#allocation6 + $0x50] sm:$0xff]  ;;  %v60_v43 = vld [vmem:[#allocation3 + $0x58] sm:$0xff] }
  0x14   :  { %130 = vst [vmem:[#allocation8] sm:$0xff] %v114_v25  ;;  %v117_v38 = vadd.f32 %v101_v26, %v52_v10  ;;  %v104_v39 = vmul.f32 %v289_v2, %v87_v27  ;;  %v89_v41 = vsub.f32 %v73_v30, %v57_v29  ;;  %v76_v44 = vld [vmem:[#allocation6 + $0x58] sm:$0xff]  ;;  %v90_v47 = vsub.f32 %v74_v36, %v58_v35  ;;  %v61_v49 = vld [vmem:[#allocation3 + $0x60] sm:$0xff]  ;;  %v62_v51 = vld [vmem:[#allocation3 + $0x68] sm:$0xff] }
  0x15   :  { %131 = vst [vmem:[#allocation8 + $0x8] sm:$0xff] %v115_v31  ;;  %v118_v45 = vadd.f32 %v102_v33, %v53_v12  ;;  %v119_v46 = vadd.f32 %v103_v34, %v54_v16  ;;  %v91_v48 = vsub.f32 %v75_v42, %v59_v37  ;;  %v77_v50 = vld [vmem:[#allocation6 + $0x60] sm:$0xff]  ;;  %v105_v53 = vmul.f32 %v289_v2, %v88_v40  ;;  %v78_v56 = vld [vmem:[#allocation6 + $0x68] sm:$0xff]  ;;  %v63_v57 = vld [vmem:[#allocation3 + $0x70] sm:$0xff] }
  0x16   :  { %132 = vst [vmem:[#allocation8 + $0x10] sm:$0xff] %v116_v32  ;;  %v120_v52 = vadd.f32 %v104_v39, %v55_v22  ;;  %v106_v54 = vmul.f32 %v289_v2, %v89_v41  ;;  %v92_v55 = vsub.f32 %v76_v44, %v60_v43  ;;  %v79_v58 = vld [vmem:[#allocation6 + $0x70] sm:$0xff]  ;;  %v107_v59 = vmul.f32 %v289_v2, %v90_v47  ;;  %v64_v63 = vld [vmem:[#allocation3 + $0x78] sm:$0xff] }
  0x17   :  { %133 = vst [vmem:[#allocation8 + $0x18] sm:$0xff] %v117_v38  ;;  %v108_v60 = vmul.f32 %v289_v2, %v91_v48  ;;  %v93_v61 = vsub.f32 %v77_v50, %v61_v49  ;;  %v94_v62 = vsub.f32 %v78_v56, %v62_v51  ;;  %v80_v0 = vld [vmem:[#allocation6 + $0x78] sm:$0xff]  ;;  %v121_v1 = vadd.f32 %v105_v53, %v56_v24 }
  0x18   :  { %134 = vst [vmem:[#allocation8 + $0x20] sm:$0xff] %v118_v45  ;;  %v122_v3 = vadd.f32 %v106_v54, %v57_v29  ;;  %v109_v4 = vmul.f32 %v289_v2, %v92_v55  ;;  %v95_v5 = vsub.f32 %v79_v58, %v63_v57  ;;  %v123_v6 = vadd.f32 %v107_v59, %v58_v35 }
  0x19   :  { %135 = vst [vmem:[#allocation8 + $0x28] sm:$0xff] %v119_v46  ;;  %v110_v7 = vmul.f32 %v289_v2, %v93_v61  ;;  %v111_v8 = vmul.f32 %v289_v2, %v94_v62  ;;  %v124_v9 = vadd.f32 %v108_v60, %v59_v37  ;;  %v96_v11 = vsub.f32 %v80_v0, %v64_v63 }
  0x1a   :  { %136 = vst [vmem:[#allocation8 + $0x30] sm:$0xff] %v120_v52  ;;  %v112_v10 = vmul.f32 %v289_v2, %v95_v5  ;;  %v125_v12 = vadd.f32 %v109_v4, %v60_v43 }
  0x1b   :  { %137 = vst [vmem:[#allocation8 + $0x38] sm:$0xff] %v121_v1  ;;  %v126_v13 = vadd.f32 %v110_v7, %v61_v49  ;;  %v113_v14 = vmul.f32 %v289_v2, %v96_v11  ;;  %v127_v15 = vadd.f32 %v111_v8, %v62_v51 }
  0x1c   :  { %138 = vst [vmem:[#allocation8 + $0x40] sm:$0xff] %v122_v3  ;;  %v128_v16 = vadd.f32 %v112_v10, %v63_v57 }
  0x1d   :  { %139 = vst [vmem:[#allocation8 + $0x48] sm:$0xff] %v123_v6  ;;  %v129_v17 = vadd.f32 %v113_v14, %v64_v63 }
  0x1e   :  { %140 = vst [vmem:[#allocation8 + $0x50] sm:$0xff] %v124_v9 }
  0x1f   :  { %141 = vst [vmem:[#allocation8 + $0x58] sm:$0xff] %v125_v12 }
  0x20   :  { %142 = vst [vmem:[#allocation8 + $0x60] sm:$0xff] %v126_v13 }
  0x21   :  { %143 = vst [vmem:[#allocation8 + $0x68] sm:$0xff] %v127_v15 }
  0x22   :  { %144 = vst [vmem:[#allocation8 + $0x70] sm:$0xff] %v128_v16 }
  0x23   :  { %145 = vst [vmem:[#allocation8 + $0x78] sm:$0xff] %v129_v17 }
  0x24   :  { %158 = dma.vmem_to_hbm [thread:$0]  %s151_s24, 2048, %s153_s27, [#allocation5], %s250_s20, %s250_s20, %s251_s21  }
  0x25   :  { %247 = dma.done.wait [#allocation5], 2048  }
  0x26   :  { %248 = vsyncadd [#allocation5], 4294965248 }
  0x27   :  { %163 = vsyncpa [#allocation4], 1 }
  0x28   :  { %164 = vsyncpa [#allocation7], 1 }
  0x29   :  { %165 = vsyncpa [#allocation5], 1 }

</bundles_post_ra>
